<compile_context>
chip_gen: v7x
topology: tpu7x:2x2x1
jax: 0.10.0
libtpu: 0.0.40
codegen_flags: <defaults>
</compile_context>

<pallas_src>
import functools

import numpy as np
import jax
import jax.numpy as jnp
from jax import lax
from jax.experimental import pallas as pl
from jax.experimental.pallas import tpu as pltpu

DROPOUT_P = 0.1
# Integer-domain threshold: keep element iff hash_bits >= round(p * 2^32).
# Plain Python int -> inlined as a literal, never a captured constant.
_DROP_THRESHOLD = int(round(DROPOUT_P * (1 << 32)))

_LANE = 128
# Double-buffered (input + output) block budget; fits every generation
# (v7x: 64 MiB physical VMEM, v5e/v6e: 128 MiB).
_VMEM_BUFFER_BUDGET = 32 << 20
_VMEM_LIMIT_BYTES = 48 << 20


def _round_up(x, m):
    return -(-x // m) * m


def _round_down(x, m):
    return (x // m) * m


def _mix_u32(x):
    """xorshift-multiply mixer (murmur3-style finalizer) on uint32 arrays."""
    # np.uint32 scalars are literalable -> no captured kernel constants.
    x = x ^ (x >> 16)
    x = x * np.uint32(0x7FEB352D)
    x = x ^ (x >> 15)
    x = x * np.uint32(0x846CA68B)
    x = x ^ (x >> 16)
    return x


def _head_dropout_kernel(seed_ref, x_ref, w_ref, b_ref, o_ref, *,
                         apply_dropout, row_stride, use_hw_prng):
    # TODO(synk): the wrapped `model` is an externally-built SwinUNETR; only
    # its final 1x1 out-conv (channel matmul + bias) is reproduced here.
    # x_ref: (C_in, T)   w_ref: (C_out, C_in)   b_ref: (C_out, 1)
    # o_ref: (C_out, T)  -- T is the lane-dense pixel tile (multiple of 128).
    y = jnp.dot(w_ref[...], x_ref[...], preferred_element_type=jnp.float32)
    y = y + b_ref[...]  # (C_out, 1) broadcasts over the lane axis

    if apply_dropout:
        c_out, t = o_ref.shape
        if use_hw_prng:
            # Hardware PRNG path (compiled TPU runs): bits come off the VALU
            # critical path.  Seed is mixed with the grid position so the
            # mask is independent of grid scheduling / core assignment.
            pltpu.prng_seed(seed_ref[0], pl.program_id(0), pl.program_id(1))
            bits = pltpu.bitcast(pltpu.prng_random_bits((c_out, t)),
                                 jnp.uint32)
        else:
            # Portable counter-hash path (also runs under interpret mode).
            nb = pl.program_id(0).astype(jnp.uint32)   # batch index
            jb = pl.program_id(1).astype(jnp.uint32)   # pixel-tile index
            seed_u = seed_ref[0].astype(jnp.uint32) * np.uint32(0x9E3779B9)
            # Per-row counter base hoisted to a (C_out, 1) column: removes the
            # whole-tile 32-bit `rows * row_stride` multiply and seed xor.
            row = lax.broadcasted_iota(jnp.uint32, (c_out, 1), 0)
            row_base = (nb * np.uint32(c_out) + row) * np.uint32(row_stride)
            row_base = (row_base + jb * np.uint32(t)) ^ seed_u
            cols = lax.broadcasted_iota(jnp.uint32, (c_out, t), 1)
            bits = _mix_u32(row_base + cols)
        # Inverted dropout: the 1/(1-p) scale is pre-folded into w and b in
        # the wrapper, so only the masked select remains here.
        y = jnp.where(bits >= _DROP_THRESHOLD, y, 0.0)

    o_ref[...] = y.astype(o_ref.dtype)


def _plan_tiles(n, c_in, c_out, hw, *, min_total_steps=4):
    """Pick a lane-aligned pixel tile from the VMEM budget and grid needs.

    Returns (tile, n_tiles, hw_padded) with hw_padded = tile * n_tiles being
    a multiple of 128 (so every block is full and every store is unmasked).
    """
    pad8 = lambda c: _round_up(c, 8)
    # f32 input block + f32 output block bytes per pixel column, with the
    # sublane padding of the channel axes (e.g. C_in=4 pads to 8).
    bytes_per_col = 4 * (pad8(c_in) + pad8(c_out))
    # Double-buffered pipeline => x2.
    budget_tile = max(_LANE,
                      _round_down(_VMEM_BUFFER_BUDGET // (2 * bytes_per_col),
                                  _LANE))

    hw_pad = _round_up(hw, _LANE)
    # Keep >= min_total_steps grid steps so v7x's two TensorCores both work.
    steps_per_image = max(1, -(-min_total_steps // n))
    par_tile = max(_LANE, _round_down(hw_pad // steps_per_image, _LANE))

    cap = max(_LANE, min(budget_tile, par_tile, hw_pad))
    n_tiles = -(-hw_pad // cap)
    tile = _round_up(-(-hw_pad // n_tiles), _LANE)   # balanced, lane-aligned
    hw_pad = tile * n_tiles
    return tile, n_tiles, hw_pad


def swin_unetr_with_dropout(x_nchw, w, b, seed, *, training=True,
                            use_hw_prng=False, out_dtype=jnp.float32):
    """Stand-in SwinUNETR head (1x1 out-conv) + nn.Dropout(0.1).

    x_nchw: (N, C_in, H, W) f32,  w: (C_out, C_in),  b: (C_out, 1).
    Returns (N, C_out, H, W) in `out_dtype` (f32 by default, matching the
    PyTorch module; pass bf16 to halve the dominant output HBM stream).
    """
    n, c_in, h, wd = x_nchw.shape
    c_out = w.shape[0]
    hw = h * wd

    tile, n_tiles, hw_pad = _plan_tiles(n, c_in, c_out, hw)
    grid = (n, n_tiles)

    # NCHW is already contiguous as (N, C_in, H*W): pure reshape, no transpose.
    x3 = x_nchw.reshape(n, c_in, hw)
    if hw_pad != hw:
        # Pad pixels up to tile * n_tiles so every block is full (no masked
        # partial stores, no whole-image fallback block); sliced off below.
        x3 = jnp.pad(x3, ((0, 0), (0, 0), (0, hw_pad - hw)))

    if training:
        inv_keep = 1.0 / (1.0 - DROPOUT_P)
        w = w * inv_keep   # tiny (C_out, C_in) constant — fold scale here
        b = b * inv_keep

    kernel = functools.partial(_head_dropout_kernel,
                               apply_dropout=training,
                               row_stride=hw_pad,
                               use_hw_prng=use_hw_prng)

    out_bytes = np.dtype(out_dtype).itemsize
    cost = pl.CostEstimate(
        flops=2 * n * hw_pad * c_in * c_out,
        transcendentals=0,
        bytes_accessed=(x3.size * 4 + n * c_out * hw_pad * out_bytes
                        + w.size * 4 + b.size * 4),
    )

    out3 = pl.pallas_call(
        kernel,
        out_shape=jax.ShapeDtypeStruct((n, c_out, hw_pad), out_dtype),
        grid_spec=pltpu.PrefetchScalarGridSpec(
            num_scalar_prefetch=1,          # dropout seed lands in SMEM
            grid=grid,
            in_specs=[
                # batch dim squeezed; pixels on lanes (tile is a multiple
                # of 128 and divides hw_pad exactly).
                pl.BlockSpec((None, c_in, tile),
                             lambda nb, jb, sref: (nb, 0, jb)),
                pl.BlockSpec((c_out, c_in), lambda nb, jb, sref: (0, 0)),
                pl.BlockSpec((c_out, 1), lambda nb, jb, sref: (0, 0)),
            ],
            out_specs=pl.BlockSpec((None, c_out, tile),
                                   lambda nb, jb, sref: (nb, 0, jb)),
        ),
        compiler_params=pltpu.CompilerParams(
            # No carried state across the grid: both axes are independent, so
            # they may legally shard across v7x's two TensorCores.
            dimension_semantics=("parallel", "parallel"),
            # Large lane tiles exceed the scoped-VMEM defaults (16/32 MiB);
            # 48 MiB is safe on every generation (v7x physical = 64 MiB).
            vmem_limit_bytes=_VMEM_LIMIT_BYTES,
        ),
        cost_estimate=cost,
    )(jnp.asarray([seed], dtype=jnp.int32), x3, w, b)

    if hw_pad != hw:
        out3 = out3[:, :, :hw]
    return out3.reshape(n, c_out, h, wd)


if __name__ == "__main__":
    key = jax.random.PRNGKey(0)
    k_x, k_w, k_b = jax.random.split(key, 3)

    N, C_IN, H, W = 2, 4, 16, 16   # small NCHW input, PyTorch convention
    C_OUT = 8                      # stand-in "segmentation head" channels

    x = jax.random.normal(k_x, (N, C_IN, H, W), dtype=jnp.float32)
    w = jax.random.normal(k_w, (C_OUT, C_IN), dtype=jnp.float32) * 0.1
    b = jax.random.normal(k_b, (C_OUT, 1), dtype=jnp.float32) * 0.01

    out = swin_unetr_with_dropout(x, w, b, seed=0)
    out = jax.block_until_ready(out)

    assert out.shape == (N, C_OUT, H, W)
    assert out.dtype == jnp.float32

    # Sanity 1: dropout should zero roughly p=0.1 of the outputs.
    zero_frac = float(jnp.mean((out == 0.0).astype(jnp.float32)))
    assert 0.01 < zero_frac < 0.3, zero_frac

    # Sanity 2: every kept element must equal the scaled 1x1-conv reference.
    ref = (jnp.einsum('oc,nchw->nohw', w, x)
           + b.reshape(1, C_OUT, 1, 1)) / (1.0 - DROPOUT_P)
    kept = out != 0.0
    err = float(jnp.max(jnp.abs(jnp.where(kept, out - ref, 0.0))))
    assert err < 1e-4, err

    print("KERNEL_OK")
</pallas_src>

<mosaic_0001>
module attributes {stable_mosaic.version = 11 : i64} {
  func.func @_head_dropout_kernel(%arg0: i32, %arg1: i32, %arg2: memref<1xi32, #tpu.memory_space<smem>>, %arg3: memref<1x4x128xf32, #tpu.memory_space<vmem>>, %arg4: memref<8x4xf32, #tpu.memory_space<vmem>>, %arg5: memref<8x1xf32, #tpu.memory_space<vmem>>, %arg6: memref<1x8x128xf32, #tpu.memory_space<vmem>>) attributes {dimension_semantics = [#tpu.dimension_semantics<parallel>, #tpu.dimension_semantics<parallel>], iteration_bounds = array<i64: 2, 2>, scalar_prefetch = 1 : i64, scratch_operands = 0 : i64, tpu.core_type = #tpu.core_type<tc>, window_params = [{transform_indices = @transform_0, window_bounds = array<i64: 1, 4, 128>}, {pipeline_mode = #tpu.pipeline_mode<synchronous>, transform_indices = @transform_1, window_bounds = array<i64: 8, 4>}, {pipeline_mode = #tpu.pipeline_mode<synchronous>, transform_indices = @transform_2, window_bounds = array<i64: 8, 1>}, {transform_indices = @transform_3, window_bounds = array<i64: 1, 8, 128>}]} {
    %c0 = arith.constant 0 : index
    %c0_0 = arith.constant 0 : index
    %0 = vector.load %arg4[%c0, %c0_0] : memref<8x4xf32, #tpu.memory_space<vmem>>, vector<8x4xf32>
    %c0_1 = arith.constant 0 : index
    %c0_2 = arith.constant 0 : index
    %c0_3 = arith.constant 0 : index
    %1 = vector.load %arg3[%c0_1, %c0_2, %c0_3] : memref<1x4x128xf32, #tpu.memory_space<vmem>>, vector<1x4x128xf32>
    %2 = vector.shape_cast %1 : vector<1x4x128xf32> to vector<4x128xf32>
    %cst = arith.constant dense<0.000000e+00> : vector<8x128xf32>
    %3 = tpu.matmul %0, %2, %cst {dimension_numbers = #tpu.dot_dimension_numbers<[1], [0], [0], [1], [0, 0, 1, 1], [], []>} : vector<8x4xf32>, vector<4x128xf32>, vector<8x128xf32> -> vector<8x128xf32>
    %c0_4 = arith.constant 0 : index
    %c0_5 = arith.constant 0 : index
    %4 = vector.load %arg5[%c0_4, %c0_5] : memref<8x1xf32, #tpu.memory_space<vmem>>, vector<8x1xf32>
    %5 = vector.broadcast %4 : vector<8x1xf32> to vector<8x128xf32>
    %6 = arith.addf %3, %5 : vector<8x128xf32>
    %c0_6 = arith.constant 0 : index
    %7 = memref.load %arg2[%c0_6] : memref<1xi32, #tpu.memory_space<smem>>
    %c-1640531527_i32 = arith.constant -1640531527 : i32
    %8 = arith.muli %7, %c-1640531527_i32 : i32
    %9 = tpu.iota {dimensions = array<i32: 0>} : vector<8x1xi32>
    %c8_i32 = arith.constant 8 : i32
    %10 = arith.muli %arg0, %c8_i32 : i32
    %11 = vector.broadcast %10 : i32 to vector<8x1xi32>
    %12 = arith.addi %11, %9 : vector<8x1xi32>
    %c256_i32 = arith.constant 256 : i32
    %13 = vector.broadcast %c256_i32 : i32 to vector<8x1xi32>
    %14 = arith.muli %12, %13 : vector<8x1xi32>
    %c128_i32 = arith.constant 128 : i32
    %15 = arith.muli %arg1, %c128_i32 : i32
    %16 = vector.broadcast %15 : i32 to vector<8x1xi32>
    %17 = arith.addi %14, %16 : vector<8x1xi32>
    %18 = vector.broadcast %8 : i32 to vector<8x1xi32>
    %19 = arith.xori %17, %18 : vector<8x1xi32>
    %20 = tpu.iota {dimensions = array<i32: 1>} : vector<8x128xi32>
    %21 = vector.broadcast %19 : vector<8x1xi32> to vector<8x128xi32>
    %22 = arith.addi %21, %20 : vector<8x128xi32>
    %c16_i32 = arith.constant 16 : i32
    %23 = vector.broadcast %c16_i32 : i32 to vector<8x128xi32>
    %24 = arith.shrui %22, %23 : vector<8x128xi32>
    %25 = arith.xori %22, %24 : vector<8x128xi32>
    %c2146121005_i32 = arith.constant 2146121005 : i32
    %26 = vector.broadcast %c2146121005_i32 : i32 to vector<8x128xi32>
    %27 = arith.muli %25, %26 : vector<8x128xi32>
    %c15_i32 = arith.constant 15 : i32
    %28 = vector.broadcast %c15_i32 : i32 to vector<8x128xi32>
    %29 = arith.shrui %27, %28 : vector<8x128xi32>
    %30 = arith.xori %27, %29 : vector<8x128xi32>
    %c-2073254261_i32 = arith.constant -2073254261 : i32
    %31 = vector.broadcast %c-2073254261_i32 : i32 to vector<8x128xi32>
    %32 = arith.muli %30, %31 : vector<8x128xi32>
    %c16_i32_7 = arith.constant 16 : i32
    %33 = vector.broadcast %c16_i32_7 : i32 to vector<8x128xi32>
    %34 = arith.shrui %32, %33 : vector<8x128xi32>
    %35 = arith.xori %32, %34 : vector<8x128xi32>
    %c429496730_i32 = arith.constant 429496730 : i32
    %36 = vector.broadcast %c429496730_i32 : i32 to vector<8x128xi32>
    %37 = arith.cmpi uge, %35, %36 : vector<8x128xi32>
    %cst_8 = arith.constant 0.000000e+00 : f32
    %38 = vector.broadcast %cst_8 : f32 to vector<8x128xf32>
    %39 = arith.select %37, %6, %38 : vector<8x128xi1>, vector<8x128xf32>
    %c0_9 = arith.constant 0 : index
    %c0_10 = arith.constant 0 : index
    %c0_11 = arith.constant 0 : index
    %40 = vector.load %arg6[%c0_9, %c0_10, %c0_11] : memref<1x8x128xf32, #tpu.memory_space<vmem>>, vector<1x8x128xf32>
    %41 = vector.shape_cast %40 : vector<1x8x128xf32> to vector<8x128xf32>
    %42 = vector.shape_cast %39 : vector<8x128xf32> to vector<1x8x128xf32>
    tpu.vector_store %arg6[%c0_9, %c0_10, %c0_11], %42 {strides = array<i32>} : memref<1x8x128xf32, #tpu.memory_space<vmem>>, vector<1x8x128xf32>,
    return
  }
  func.func @transform_0(%arg0: i32, %arg1: i32, %arg2: memref<1xi32, #tpu.memory_space<smem>>) -> (i32, i32, i32) {
    %c0_i32 = arith.constant 0 : i32
    %c0_i32_0 = arith.constant 0 : i32
    return %arg0, %c0_i32, %arg1 : i32, i32, i32
  }
  func.func @transform_1(%arg0: i32, %arg1: i32, %arg2: memref<1xi32, #tpu.memory_space<smem>>) -> (i32, i32) {
    %c0_i32 = arith.constant 0 : i32
    %c0_i32_0 = arith.constant 0 : i32
    %c0_i32_1 = arith.constant 0 : i32
    return %c0_i32, %c0_i32_0 : i32, i32
  }
  func.func @transform_2(%arg0: i32, %arg1: i32, %arg2: memref<1xi32, #tpu.memory_space<smem>>) -> (i32, i32) {
    %c0_i32 = arith.constant 0 : i32
    %c0_i32_0 = arith.constant 0 : i32
    %c0_i32_1 = arith.constant 0 : i32
    return %c0_i32, %c0_i32_0 : i32, i32
  }
  func.func @transform_3(%arg0: i32, %arg1: i32, %arg2: memref<1xi32, #tpu.memory_space<smem>>) -> (i32, i32, i32) {
    %c0_i32 = arith.constant 0 : i32
    %c0_i32_0 = arith.constant 0 : i32
    return %arg0, %c0_i32, %arg1 : i32, i32, i32
  }
}

</mosaic_0001>

<bundles_post_ra>
// kernel: tpu_custom_call.1
= control target key start
LH: loop header
LB: loop body
LE: loop exit
PB: predicated region body
PF: predicated region fallthrough
CT: control target
= control target key end

     0   :  { %s775_s0 = inlined_call_operand.<no memory space> [shape: s32[1], index: 0, kind: input, shape index: {}]   ;;  %s776_s1 = inlined_call_operand.vmem [shape: f32[2,4,256], index: 1, kind: input, shape index: {}]   ;;  %s777_s2 = inlined_call_operand.vmem [shape: f32[8,4], index: 2, kind: input, shape index: {}]   ;;  %s778_s3 = inlined_call_operand.vmem [shape: f32[8,1], index: 3, kind: input, shape index: {}]   ;;  %s779_s4 = inlined_call_operand.hbm [shape: f32[2,8,256], index: 4, kind: output, shape index: {}]  }
   0x1   :  { %9 = sst [smem:[#allocation3]] %s775_s0 }
   0x2   :  { %10 = vsyncpa [#allocation5], 0 }
   0x3   :  { %12 = vsyncpa [#allocation5 + $0x1], 0  ;;  %s630_s17 = smov 0   ;;  %s632_s18 = smov 0  }
   0x4   :  { %s634_s19 = smov 0   ;;  %s636_s20 = smov 0  }
   0x5   :  { %s638_s21 = smov 0   ;;  %s640_s22 = smov 0  }
   0x6   :  { %s642_s23 = smov 0   ;;  %s644_s24 = smov 0  }
   0x7 LB: > { %s403_s0 = sadd.s32 4294967295, %s596_s24   ;;  %s404_s25 = sadd.s32 4294967294, %s596_s24   ;;  %s596_s24 = sphi %s644_s24, %s18_s24   ;;  %s592_s23 = sphi %s642_s23, %s788_s23   ;;  %s588_s22 = sphi %s640_s22, %s787_s22   ;;  %s584_s21 = sphi %s638_s21, %s786_s21   ;;  %s580_s20 = sphi %s636_s20, %s785_s20   ;;  %s576_s19 = sphi %s634_s19, %s784_s19   ;;  %s572_s18 = sphi %s632_s18, %s783_s18   ;;  %s568_s17 = sphi %s630_s17, %s782_s17  }
   0x8   : > { %s27_s26 = sadd.s32 1, %s588_s22  ;;  %s30_s27 = sadd.s32 1, %s592_s23 }
   0x9   : > { %p28_p0 = scmp.ge.s32.totalorder %s27_s26, 2  ;;  %p119_p1 = scmp.ne.s32.totalorder %s576_s19, %s572_s18 }
   0xa   : > { %p120_p2 = scmp.eq.s32.totalorder %s403_s0, 3  ;;  %p125_p5 = scmp.ne.s32.totalorder %s572_s18, %s568_s17 }
   0xb   : > { %s790_s26 = smov (%p28_p0, %s27_s26), 0  ;;  %s792_s27 = smov (!%p28_p0, %s30_s27), %s592_s23 }
   0xc   : > { %s105_s28 = ssub.s32 %s588_s22, %s790_s26  ;;  %p681_p3 = por %p120_p2, %p119_p1 }
   0xd   : > { %p32_p4 = scmp.ge.s32.totalorder %s792_s27, 2  ;;  %p126_p6 = scmp.eq.s32.totalorder %s404_s25, 3 }
   0xe   : > { %p407_p7 = scmp.ge.s32.totalorder %s596_s24, 1  ;;  %p161_p9 = scmp.lt.s32.totalorder %s596_s24, 5 }
   0xf   : > { %s794_s27 = smov (%p32_p4, %s792_s27), 0  ;;  %p690_p8 = por %p126_p6, %p125_p5 }
  0x10   : > { %s104_s5 = ssub.s32 %s592_s23, %s794_s27  ;;  %s109_s6 = sadd.s32 1, %s576_s19 }
  0x11   : > { %s106_s7 = sor.u32 %s105_s28, %s104_s5  ;;  %p162_p10 = pnand %p407_p7, %p161_p9 }
  0x12   : > { %p107_p11 = scmp.eq.s32.totalorder %s106_s7, 0  ;;  %p188_p12 = scmp.lt.s32.totalorder (!%p162_p10), %s584_s21, 1  ;;  %v598_v0 = vmov (!%p162_p10), 0.0   ;;  %vm599_vm0 = vmmov (!%p162_p10), 0   ;;  %v198_v1 = vld [vmem:[%s778_s3] sm:$0xff] (!%p162_p10)  ;;  %v600_v2 = vmov (!%p162_p10), 0   ;;  %v284_v5 = vlaneseq (!%p162_p10) }
  0x13   : > { %165 = sbr.rel (%p162_p10) target bundleno = 263 (0x107), region = 32  ;;  %p190_p13 = scmp.lt.s32.totalorder (!%p162_p10), %s580_s20, 1  ;;  %422 = vmatprep.subr.mxu0 (!%p162_p10), %v598_v0  ;;  %424 = vmatprep.mubr.msk.f32.mxu0 (!%p162_p10), %vm599_vm0, %v598_v0  ;;  %vm208_vm1 = vcmask (!%p162_p10), 1043456   ;;  %v196_v3 = vld [vmem:[%s777_s2] sm:$0xff] (!%p162_p10)  ;;  %vm204_vm2 = vcmask (!%p162_p10), 31744  }
  0x14   : > { %s699_s8 = scalar_select %p107_p11, %s576_s19, %s109_s6  }
  0x15   : > { %501 = vset.pattern.permute.xlu0 (!%p162_p10), %v600_v2  ;;  %s413_s6 = sshll.u32 (!%p162_p10), %s584_s21, 3  ;;  %v285_v6 = vshrl.u32 (!%p162_p10), %v284_v5, 7  ;;  %s282_s7 = sld [smem:[#allocation3]] (!%p162_p10)  ;;  %v296_v14 = vand.u32 (!%p162_p10), 127, %v284_v5 }
  0x16   : > { %201 = vperm.xlu0 (!%p162_p10), %501, %v198_v1   ;;  %v287_v7 = vstv (!%p162_p10), %s413_s6  ;;  %s414_s9 = sshll.u32 (!%p162_p10), %s580_s20, 7  ;;  %s601_s6 = smov (!%p162_p10), [#allocation4]  }
  0x17   : > { %v288_v8 = vadd.s32 (!%p162_p10), %v287_v7, %v285_v6  ;;  %v291_v10 = vstv (!%p162_p10), %s414_s9 }
  0x19   : > { %v289_v9 = vmul.u32 (!%p162_p10), 256, %v288_v8 }
  0x1a   : > { %s189_s11 = scalar_select %p188_p12, %s584_s21, 1 }
  0x1b   : > { %s191_s12 = scalar_select %p190_p13, %s580_s20, 1  ;;  %v292_v11 = vadd.s32 %v291_v10, %v289_v9 }
  0x1c   : > { %s409_s13 = sshll.u32 %s189_s11, 1  ;;  %s283_s10 = smul.u32 2654435769, %s282_s7 }
  0x1d   : > { %s193_s14 = sadd.s32 %s409_s13, %s191_s12  ;;  %s185_s11 = sand.u32 1, %s572_s18  }
  0x1e   : > { %s410_s15 = sshll.u32 %s193_s14, 2  ;;  %v293_v12 = vstv %s283_s10  ;;  %s408_s12 = sshll.u32 %s185_s11, 3 }
  0x1f   : > { %s195_s25 = scalar_lea.vmem %s776_s1, %s410_s15  ;;  %v294_v13 = vxor.u32 %v293_v12, %v292_v11  ;;  %s416_s13 = sshll.u32 %s584_s21, 1 }
  0x20   : > { %v197_v4 = vld [vmem:[%s195_s25] sm:$0xf]  ;;  %s321_s14 = sadd.s32 %s580_s20, %s416_s13  ;;  %s187_s16 = scalar_lea.vmem [#allocation4], %s408_s12 }
  0x21   : > { %423 = vmatpush3.msk.msra.mxu0 %vm208_vm1, %v197_v4  ;;  %v297_v15 = vadd.s32 %v296_v14, %v294_v13  ;;  %s417_s15 = sshll.u32 %s321_s14, 7  ;;  %s325_s0 = sshll.u32 %s187_s16, 4  ;;  %s724_s0 = int_to_ptr.vmem [resolvable:$true] %s325_s0 }
  0x22   : > { %425 = vmatmul.mubr.msk.f32.vlgmr.msra.gmra.mrb[0].mxu0 %vm204_vm2, %v196_v3  ;;  %s722_s5 = scalar_lea.hbm %s779_s4, %s417_s15  ;;  %s310_s20 = scalar_lea.sflag [#allocation5], %s185_s11 }
  0x23   : > { %v298_v16 = vshrl.u32 %v297_v15, 16  ;;  %s502_s21 = scalar_lea.vmem %s724_s0, 128  ;;  %s506_s7 = sshll.u32 %s601_s6, 4  ;;  %s507_s7 = int_to_ptr.vmem [resolvable:$false] %s506_s7 }
  0x24   : > { %p503_p0 = scmp.ne.s32.totalorder %s724_s0, %s502_s21  ;;  %s508_s9 = scalar_lea.vmem %s507_s7, 256 }
  0x25   : > { %v299_v17 = vxor.u32 %v298_v16, %v297_v15  ;;  %p509_p4 = scmp.lt.s32.totalorder %s724_s0, %s507_s7  ;;  %p510_p5 = scmp.lt.s32.totalorder %s508_s9, %s502_s21 }
  0x26   : > { %p504_p1 = pnand %p503_p0, %p681_p3 }
  0x27   : > { %v300_v18 = vmul.u32 2146121005, %v299_v17  ;;  %p511_p6 = por %p510_p5, %p509_p4 }
  0x28   : > { %p505_p2 = pneg %p504_p1 }
  0x29   : > { %v301_v19 = vshrl.u32 %v300_v18, 15 }
  0x2a   : > { %p512_p7 = pnand %p511_p6, %p505_p2 }
  0x2b   : > { %v302_v20 = vxor.u32 %v301_v19, %v300_v18 }
  0x2d   : > { %v303_v21 = vmul.u32 2221713035, %v302_v20 }
  0x2f   : > { %v304_v22 = vshrl.u32 %v303_v21, 16 }
  0x31   : > { %v305_v23 = vxor.u32 %v304_v22, %v303_v21 }
  0x33   : > { %vm306_vm3 = vcmp.ge.u32.totalorder %v305_v23, 429496730 }
  0x95   : > { %v202_v24 = vpop.permute.xlu0 %201 }
  0xf5   : > { %v278_v25 = vpop.f32.mrb[0].mxu0 }
  0xf6   : > { %v279_v26 = vadd.f32 %v278_v25, %v202_v24  ;;  %v426_v27 = vpop.f32.mrb[1].mxu0 }
  0xf8   : > { %v307_v28 = vsel %vm306_vm3, %v279_v26, 0.0 }
  0xf9   : > { %308 = vst [vmem:[%s187_s16] sm:$0xff] %v307_v28 }
  0xfa   : > { %515 = shalt.err (!%p512_p7)
}
  0xfb   : > { %s516_s10 = scalar_lea.hbm %s722_s5, 128  ;;  %s520_s13 = scalar_lea.hbm %s779_s4, 512 }
  0xfc   : > { %p517_p9 = scmp.ne.s32.totalorder %s722_s5, %s516_s10  ;;  %p521_p12 = scmp.lt.u32.totalorder %s722_s5, %s779_s4 }
  0xfd   : > { %p522_p13 = scmp.lt.u32.totalorder %s520_s13, %s516_s10  ;;  %p524_p1 = scmp.lt.u32.totalorder %s516_s10, %s722_s5 }
  0xfe   : > { %p518_p10 = pnand %p517_p9, %p681_p3 }
  0xff   : > { %p523_p0 = por %p522_p13, %p521_p12 }
 0x100   : > { %p519_p11 = pneg %p518_p10 }
 0x101   : > { %p525_p2 = por %p524_p1, %p523_p0 }
 0x103   : > { %p526_p4 = pnand %p525_p2, %p519_p11 }
 0x105   : > { %529 = shalt.err (!%p526_p4)
}
 0x106   : > { %427 = dma.vmem_to_hbm [thread:$0]  (%p681_p3), %s724_s0, 128, %s722_s5, %s310_s20  }
 0x107 PF: > { %p433_p5 = scmp.ge.s32.totalorder %s596_s24, 2  ;;  %s337_s16 = sand.u32 1, %s568_s17  }
 0x108   : > { %s338_s25 = scalar_lea.sflag [#allocation5], %s337_s16 }
 0x109   : > { %p430_p6 = pnand %p433_p5, %p690_p8 }
 0x10b   : > { %563 = dma.done.wait (!%p430_p6), %s338_s25, 128  }
 0x10c   : > { %565 = vsyncadd (!%p430_p6), %s338_s25, 4294967168  ;;  %s18_s24 = sadd.s32 1, %s596_s24   ;;  %s782_s17 = smov %s572_s18 }
 0x10d   : > { %p15_p7 = scmp.ge.s32.totalorder %s18_s24, 6   ;;  %s783_s18 = smov %s576_s19 }
 0x10e   : > { %s784_s19 = smov %s699_s8  ;;  %s785_s20 = smov %s588_s22 }
 0x10f   : > { %s786_s21 = smov %s592_s23  ;;  %s787_s22 = smov %s790_s26 }
 0x110   : > { %s788_s23 = smov %s794_s27  ;;  %17 = sbr.rel (!%p15_p7) target bundleno = 7 (0x7), region = 67 }
 0x117   :  { %343 = vsyncpa [#allocation5], 1 }
 0x118   :  { %345 = vsyncpa [#allocation5 + $0x1], 1 }

</bundles_post_ra>
